<compile_context>
chip_gen: v5e
topology: v5e:2x2
jax: 0.10.0
libtpu: 0.0.40
codegen_flags: <defaults>
</compile_context>

<pallas_src>
import functools

import jax
import jax.numpy as jnp
from jax import lax
from jax.experimental import pallas as pl
from jax.experimental.pallas import tpu as pltpu


_ENC_TILE_TARGET_BYTES = 2 << 20   # ~2 MiB/buffer: safe on v5e/v6e/v7x
_PALLAS_MIN_ENC_BYTES = 256 << 10  # below this, pallas_call overhead dominates


def _round_up(x, m):
    return (x + m - 1) // m * m


def _cdiv(a, b):
    return (a + b - 1) // b


def _attn_general_kernel(hw_ref, enc_ref, out_ref, *, seq_len, tile_s):
    i = pl.program_id(0)

    # Scores for this tile of encoder outputs: hW . enc_tile^T -> (1, tile_s).
    # lax.dot_general with explicit dims -> no materialized transpose.
    s = lax.dot_general(
        hw_ref[...], enc_ref[...],
        dimension_numbers=(((1,), (1,)), ((), ())),
        preferred_element_type=jnp.float32)

    # Stash raw scores. The output block index is constant across the grid,
    # so out_ref stays VMEM-resident for the whole kernel.
    out_ref[pl.ds(i, 1), :] = s

    # Finalize the softmax at the last grid step (needs the global max / sum).
    @pl.when(i == pl.num_programs(0) - 1)
    def _():
        scores = out_ref[...]                                   # (n_tiles, tile_s)
        row = lax.broadcasted_iota(jnp.int32, scores.shape, 0)
        col = lax.broadcasted_iota(jnp.int32, scores.shape, 1)
        valid = (row * tile_s + col) < seq_len
        scores = jnp.where(valid, scores, -jnp.inf)

        m = jnp.max(scores, axis=1, keepdims=True)              # (n_tiles, 1)
        m = jnp.max(m, axis=0, keepdims=True)                   # (1, 1)
        e = jnp.exp(scores - m)                                 # padded -> exp(-inf)=0
        denom = jnp.sum(e, axis=1, keepdims=True)
        denom = jnp.sum(denom, axis=0, keepdims=True)           # (1, 1)
        out_ref[...] = e / denom                                # exact normalization


def attn_forward(hidden, encoder_outputs, w, b=None, *, use_pallas=None):
    """Attn(method='general') forward.

    hidden:           (1, H) float32
    encoder_outputs:  (S, H) float32
    w:                (H, H) float32, nn.Linear convention (out_features, in_features)
    b:                (H,)   float32 -- unused: h.(We+b) = hW.e + h.b and the
                      constant h.b cancels under the softmax.

    Returns attention weights of shape (1, 1, S), matching the PyTorch module.
    """
    del b  # bias cancels under softmax
    hidden = jnp.asarray(hidden, jnp.float32).reshape(1, -1)
    encoder_outputs = jnp.asarray(encoder_outputs, jnp.float32)
    S, H = encoder_outputs.shape

    # Hoisted hW = h @ W (contract W's out_features axis).  HIGHEST precision so
    # this tiny matvec is not run at bf16 MXU precision by XLA.
    hw = jnp.dot(hidden, jnp.asarray(w, jnp.float32),
                 precision=lax.Precision.HIGHEST)               # (1, H)

    if use_pallas is None:
        use_pallas = (S * H * 4) >= _PALLAS_MIN_ENC_BYTES
    if not use_pallas:
        # Small-shape fast path: the math is nanoseconds, pallas_call is not.
        scores = jnp.dot(hw, encoder_outputs.T,
                         precision=lax.Precision.HIGHEST)       # (1, S)
        return jax.nn.softmax(scores, axis=-1).reshape(1, 1, S)

    # ---- tile selection: ~2 MiB enc buffers, balanced, multiple of 128 rows.
    s_pad128 = _round_up(S, 128)
    target_rows = max(128, ((_ENC_TILE_TARGET_BYTES // (4 * H)) // 128) * 128)
    n_tiles = max(1, _cdiv(s_pad128, target_rows))
    tile_s = _round_up(_cdiv(s_pad128, n_tiles), 128)
    s_pad = n_tiles * tile_s

    if s_pad != S:
        encoder_outputs = jnp.pad(encoder_outputs, ((0, s_pad - S), (0, 0)))

    # ---- explicit VMEM budget (enc double-buffered + resident output + hW).
    enc_block_bytes = tile_s * H * 4
    out_block_bytes = n_tiles * tile_s * 4
    hw_block_bytes = _round_up(H, 128) * 8 * 4                  # generous (layout pad)
    plan_bytes = 2 * enc_block_bytes + 2 * out_block_bytes + 2 * hw_block_bytes
    vmem_limit_bytes = int(min(max(plan_bytes + (4 << 20), 16 << 20), 48 << 20))

    kernel = functools.partial(_attn_general_kernel, seq_len=S, tile_s=tile_s)

    out = pl.pallas_call(
        kernel,
        out_shape=jax.ShapeDtypeStruct((n_tiles, tile_s), jnp.float32),
        grid_spec=pltpu.PrefetchScalarGridSpec(
            num_scalar_prefetch=0,
            grid=(n_tiles,),
            in_specs=[
                pl.BlockSpec((1, H), lambda i: (0, 0)),         # hW  (resident, tiny)
                pl.BlockSpec((tile_s, H), lambda i: (i, 0)),    # enc (streamed)
            ],
            out_specs=pl.BlockSpec((n_tiles, tile_s), lambda i: (0, 0)),
        ),
        # Softmax finalization needs every score tile -> reduction axis.
        compiler_params=pltpu.CompilerParams(
            dimension_semantics=("arbitrary",),
            vmem_limit_bytes=vmem_limit_bytes,
        ),
    )(hw, encoder_outputs)

    return out.reshape(-1)[:S].reshape(1, 1, S)


def reference_forward(hidden, encoder_outputs, w, b):
    # Pure-JAX reference mirroring the PyTorch module (nn.Linear with bias,
    # per-position score, softmax).  HIGHEST precision so the comparison is
    # not dominated by XLA's default low-precision f32 matmul on TPU.
    energy = jnp.dot(encoder_outputs, w.T,
                     precision=lax.Precision.HIGHEST) + b       # (S, H)
    e = jnp.dot(energy, hidden.reshape(-1),
                precision=lax.Precision.HIGHEST)                # (S,)
    return jax.nn.softmax(e).reshape(1, 1, -1)


if __name__ == "__main__":
    SEQ_LEN = 8
    HIDDEN = 32

    key = jax.random.PRNGKey(0)
    k_h, k_enc, k_w, k_b = jax.random.split(key, 4)

    # Deterministic parameter init (synthetic; shapes follow nn.Linear(H, H)).
    bound = 1.0 / (HIDDEN ** 0.5)
    w = jax.random.uniform(k_w, (HIDDEN, HIDDEN), jnp.float32, -bound, bound)
    b = jax.random.uniform(k_b, (HIDDEN,), jnp.float32, -bound, bound)

    hidden = jax.random.normal(k_h, (1, HIDDEN), jnp.float32)
    encoder_outputs = jax.random.normal(k_enc, (SEQ_LEN, HIDDEN), jnp.float32)

    ref = reference_forward(hidden, encoder_outputs, w, b)

    # Force the Pallas path (auto-dispatch would bypass it at these tiny shapes).
    out = attn_forward(hidden, encoder_outputs, w, b, use_pallas=True)
    jax.block_until_ready(out)

    assert out.shape == (1, 1, SEQ_LEN), out.shape
    assert jnp.allclose(jnp.sum(out), 1.0, atol=1e-3), float(jnp.sum(out))
    # Tolerance covers MXU f32-matmul pass precision; bias drop is exact under softmax.
    assert jnp.allclose(out, ref, atol=2e-3, rtol=2e-3), float(jnp.max(jnp.abs(out - ref)))

    # Auto-dispatch (small-shape jnp fast path) must agree as well.
    out_auto = attn_forward(hidden, encoder_outputs, w, b)
    jax.block_until_ready(out_auto)
    assert jnp.allclose(out_auto, ref, atol=2e-3, rtol=2e-3)

    print("KERNEL_OK")
</pallas_src>

<mosaic_0001>
module attributes {stable_mosaic.version = 11 : i64} {
  func.func @_attn_general_kernel(%arg0: i32, %arg1: memref<1x32xf32, #tpu.memory_space<vmem>>, %arg2: memref<128x32xf32, #tpu.memory_space<vmem>>, %arg3: memref<1x128xf32, #tpu.memory_space<vmem>>) attributes {dimension_semantics = [#tpu.dimension_semantics<arbitrary>], iteration_bounds = array<i64: 1>, scalar_prefetch = 0 : i64, scratch_operands = 0 : i64, tpu.core_type = #tpu.core_type<tc>, window_params = [{pipeline_mode = #tpu.pipeline_mode<synchronous>, transform_indices = @transform_0, window_bounds = array<i64: 1, 32>}, {transform_indices = @transform_1, window_bounds = array<i64: 128, 32>}, {pipeline_mode = #tpu.pipeline_mode<synchronous>, transform_indices = @transform_2, window_bounds = array<i64: 1, 128>}]} {
    %c0 = arith.constant 0 : index
    %c0_0 = arith.constant 0 : index
    %0 = vector.load %arg1[%c0, %c0_0] : memref<1x32xf32, #tpu.memory_space<vmem>>, vector<1x32xf32>
    %c0_1 = arith.constant 0 : index
    %c0_2 = arith.constant 0 : index
    %1 = vector.load %arg2[%c0_1, %c0_2] : memref<128x32xf32, #tpu.memory_space<vmem>>, vector<128x32xf32>
    %cst = arith.constant dense<0.000000e+00> : vector<1x128xf32>
    %2 = tpu.matmul %0, %1, %cst {dimension_numbers = #tpu.dot_dimension_numbers<[1], [1], [0], [0], [0, 0, 1, 0], [], []>} : vector<1x32xf32>, vector<128x32xf32>, vector<1x128xf32> -> vector<1x128xf32>
    %3 = arith.index_cast %arg0 : i32 to index
    %c0_3 = arith.constant 0 : index
    %4 = vector.load %arg3[%3, %c0_3] : memref<1x128xf32, #tpu.memory_space<vmem>>, vector<1x128xf32>
    tpu.vector_store %arg3[%3, %c0_3], %2 {strides = array<i32>} : memref<1x128xf32, #tpu.memory_space<vmem>>, vector<1x128xf32>,
    %c0_i32 = arith.constant 0 : i32
    %5 = arith.cmpi eq, %arg0, %c0_i32 : i32
    %6 = arith.extui %5 : i1 to i32
    %c0_i32_4 = arith.constant 0 : i32
    %7 = arith.cmpi ne, %6, %c0_i32_4 : i32
    scf.if %7 {
      %c0_5 = arith.constant 0 : index
      %c0_6 = arith.constant 0 : index
      %8 = vector.load %arg3[%c0_5, %c0_6] : memref<1x128xf32, #tpu.memory_space<vmem>>, vector<1x128xf32>
      %9 = tpu.iota {dimensions = array<i32: 0>} : vector<1x128xi32>
      %10 = tpu.iota {dimensions = array<i32: 1>} : vector<1x128xi32>
      %c128_i32 = arith.constant 128 : i32
      %11 = vector.broadcast %c128_i32 : i32 to vector<1x128xi32>
      %12 = arith.muli %9, %11 : vector<1x128xi32>
      %13 = arith.addi %12, %10 : vector<1x128xi32>
      %c8_i32 = arith.constant 8 : i32
      %14 = vector.broadcast %c8_i32 : i32 to vector<1x128xi32>
      %15 = arith.cmpi slt, %13, %14 : vector<1x128xi32>
      %cst_7 = arith.constant 0xFF800000 : f32
      %16 = vector.broadcast %cst_7 : f32 to vector<1x128xf32>
      %17 = arith.select %15, %8, %16 : vector<1x128xi1>, vector<1x128xf32>
      %cst_8 = arith.constant dense<0xFF800000> : vector<1xf32>
      %18 = vector.multi_reduction <maximumf>, %17, %cst_8 [1] : vector<1x128xf32> to vector<1xf32>
      %19 = vector.shape_cast %18 : vector<1xf32> to vector<1x1xf32>
      %cst_9 = arith.constant dense<0xFF800000> : vector<1xf32>
      %20 = vector.multi_reduction <maximumf>, %19, %cst_9 [0] : vector<1x1xf32> to vector<1xf32>
      %21 = vector.shape_cast %20 : vector<1xf32> to vector<1x1xf32>
      %22 = vector.broadcast %21 : vector<1x1xf32> to vector<1x128xf32>
      %23 = arith.subf %17, %22 : vector<1x128xf32>
      %24 = math.exp %23 : vector<1x128xf32>
      %cst_10 = arith.constant dense<0.000000e+00> : vector<1xf32>
      %25 = vector.multi_reduction <add>, %24, %cst_10 [1] : vector<1x128xf32> to vector<1xf32>
      %26 = vector.shape_cast %25 : vector<1xf32> to vector<1x1xf32>
      %cst_11 = arith.constant dense<0.000000e+00> : vector<1xf32>
      %27 = vector.multi_reduction <add>, %26, %cst_11 [0] : vector<1x1xf32> to vector<1xf32>
      %28 = vector.shape_cast %27 : vector<1xf32> to vector<1x1xf32>
      %29 = vector.broadcast %28 : vector<1x1xf32> to vector<1x128xf32>
      %30 = arith.divf %24, %29 : vector<1x128xf32>
      %c0_12 = arith.constant 0 : index
      %c0_13 = arith.constant 0 : index
      %31 = vector.load %arg3[%c0_12, %c0_13] : memref<1x128xf32, #tpu.memory_space<vmem>>, vector<1x128xf32>
      tpu.vector_store %arg3[%c0_12, %c0_13], %30 {strides = array<i32>} : memref<1x128xf32, #tpu.memory_space<vmem>>, vector<1x128xf32>,
    } else {
    }
    return
  }
  func.func @transform_0(%arg0: i32) -> (i32, i32) {
    %c0_i32 = arith.constant 0 : i32
    %c0_i32_0 = arith.constant 0 : i32
    %c0_i32_1 = arith.constant 0 : i32
    return %c0_i32, %c0_i32_0 : i32, i32
  }
  func.func @transform_1(%arg0: i32) -> (i32, i32) {
    %c0_i32 = arith.constant 0 : i32
    %c0_i32_0 = arith.constant 0 : i32
    return %arg0, %c0_i32 : i32, i32
  }
  func.func @transform_2(%arg0: i32) -> (i32, i32) {
    %c0_i32 = arith.constant 0 : i32
    %c0_i32_0 = arith.constant 0 : i32
    %c0_i32_1 = arith.constant 0 : i32
    return %c0_i32, %c0_i32_0 : i32, i32
  }
}

</mosaic_0001>

<bundles_post_ra>
// kernel: tpu_custom_call.1
= control target key start
LH: loop header
LB: loop body
LE: loop exit
PB: predicated region body
PF: predicated region fallthrough
CT: control target
= control target key end

     0   :  { %vm29_vm0 = vcmask 261120   ;;  %s293_s0 = inlined_call_operand.vmem [shape: f32[1,32], index: 0, kind: input, shape index: {}]   ;;  %s294_s1 = inlined_call_operand.vmem [shape: f32[128,32], index: 1, kind: input, shape index: {}]   ;;  %s295_s2 = inlined_call_operand.hbm [shape: f32[1,128], index: 2, kind: output, shape index: {}]  }
   0x1   :  { %v28_v0 = vld [vmem:[%s294_s1 + $0x78] sm:$0xff]  ;;  %v27_v1 = vld [vmem:[%s294_s1 + $0x70] sm:$0xff] }
   0x2   :  { %158 = vmatpush.xpose.msk.msra.mxu0 %vm29_vm0, %v28_v0 }
   0x3   :  { %7 = vsyncpa [#allocation3], 0  ;;  %v26_v2 = vld [vmem:[%s294_s1 + $0x68] sm:$0xff]  ;;  %v25_v3 = vld [vmem:[%s294_s1 + $0x60] sm:$0xff]  ;;  %v107_v17 = vlaneseq  ;;  %vm115_vm2 = vcmask 1040384   ;;  %s149_s17 = sshll.u32 %s295_s2, 4  ;;  %s150_s17 = int_to_ptr.hbm [resolvable:$true] %s149_s17 }
   0x4   :  { %v24_v4 = vld [vmem:[%s294_s1 + $0x58] sm:$0xff]  ;;  %v23_v5 = vld [vmem:[%s294_s1 + $0x50] sm:$0xff]  ;;  %v22_v6 = vld [vmem:[%s294_s1 + $0x48] sm:$0xff] }
   0x5   :  { %v21_v7 = vld [vmem:[%s294_s1 + $0x40] sm:$0xff]  ;;  %v20_v8 = vld [vmem:[%s294_s1 + $0x38] sm:$0xff]  ;;  %v19_v9 = vld [vmem:[%s294_s1 + $0x30] sm:$0xff]  ;;  %v108_v18 = vshrl.u32 %v107_v17, 7  ;;  %v110_v19 = vand.u32 127, %v107_v17 }
   0x6   :  { %159 = vmatpush.xpose.msk.msra.mxu0 %vm29_vm0, %v27_v1  ;;  %v18_v10 = vld [vmem:[%s294_s1 + $0x28] sm:$0xff]  ;;  %v17_v11 = vld [vmem:[%s294_s1 + $0x20] sm:$0xff]  ;;  %v16_v12 = vld [vmem:[%s294_s1 + $0x18] sm:$0xff] }
   0x7   :  { %v15_v13 = vld [vmem:[%s294_s1 + $0x10] sm:$0xff]  ;;  %v14_v14 = vld [vmem:[%s294_s1 + $0x8] sm:$0xff]  ;;  %v13_v15 = vld [vmem:[%s294_s1] sm:$0xff]  ;;  %v111_v20 = vmul.u32 128, %v108_v18 }
   0x8   :  { %v12_v16 = vld [vmem:[%s293_s0] sm:$0x1]  ;;  %s206_s0 = smov [#allocation2]  }
   0x9   :  { %v112_v22 = vadd.s32 %v111_v20, %v110_v19  ;;  %s147_s1 = sshll.u32 %s206_s0, 4  ;;  %s148_s1 = int_to_ptr.vmem [resolvable:$true] %s147_s1 }
   0xa   :  { %160 = vmatpush.xpose.msk.msra.mxu0 %vm29_vm0, %v26_v2 }
   0xb   :  { %vm113_vm1 = vcmp.lt.s32.totalorder %v112_v22, 8 }
   0xe   :  { %161 = vmatpush.xpose.msk.msra.mxu0 %vm29_vm0, %v25_v3 }
  0x12   :  { %162 = vmatpush.xpose.msk.msra.mxu0 %vm29_vm0, %v24_v4 }
  0x16   :  { %163 = vmatpush.xpose.msk.msra.mxu0 %vm29_vm0, %v23_v5 }
  0x1a   :  { %164 = vmatpush.xpose.msk.msra.mxu0 %vm29_vm0, %v22_v6 }
  0x1e   :  { %165 = vmatpush.xpose.msk.msra.mxu0 %vm29_vm0, %v21_v7 }
  0x22   :  { %166 = vmatpush.xpose.msk.msra.mxu0 %vm29_vm0, %v20_v8 }
  0x26   :  { %167 = vmatpush.xpose.msk.msra.mxu0 %vm29_vm0, %v19_v9 }
  0x2a   :  { %168 = vmatpush.xpose.msk.msra.mxu0 %vm29_vm0, %v18_v10 }
  0x2e   :  { %169 = vmatpush.xpose.msk.msra.mxu0 %vm29_vm0, %v17_v11 }
  0x32   :  { %170 = vmatpush.xpose.msk.msra.mxu0 %vm29_vm0, %v16_v12 }
  0x36   :  { %171 = vmatpush.xpose.msk.msra.mxu0 %vm29_vm0, %v15_v13 }
  0x3a   :  { %172 = vmatpush.xpose.msk.msra.mxu0 %vm29_vm0, %v14_v14 }
  0x3e   :  { %173 = vmatpush.xpose.msk.msra.mxu0 %vm29_vm0, %v13_v15 }
  0x41   :  { %174 = vmatmul.msk.f32.vlgmr.msra.gmra.mxu0 %vm29_vm0, %v12_v16 }
  0xbe   :  { %v98_v21 = vpop.f32.mrf.mxu0 }
  0xbf   :  { %101 = vst [vmem:[#allocation2] sm:$0x1] %v98_v21 }
  0xc6   :  { %v106_v23 = vld [vmem:[#allocation2] sm:$0x1] }
  0xc7   :  { %v114_v24 = vsel %vm113_vm1, %v106_v23, -inf }
  0xc8   :  { %v116_v25 = vsel %vm115_vm2, %v114_v24, -inf }
  0xc9   :  { %117 = vmax.xlane.f32.xlu0 %v116_v25 }
 0x13c   :  { %v118_v26 = vpop.xlane.xlu0 %117 }
 0x13d   :  { %v119_v27 = vsub.f32 %v114_v24, %v118_v26 }
 0x13f   :  { %v120_v28 = vmul.f32 1.442695, %v119_v27 }
 0x141   :  { %176 = vpow2.f32 %v120_v28 }
 0x147   :  { %v177_v29 = vpop.eup %176 }
 0x148   :  { %v122_v30 = vsel %vm115_vm2, %v177_v29, 0.0 }
 0x149   :  { %123 = vadd.xlane.f32.xlu0 %v122_v30 }
 0x1bc   :  { %v124_v31 = vpop.xlane.xlu0 %123 }
 0x1bd   :  { %178 = vrcp.f32 %v124_v31  ;;  %v137_v35 = vand.u32 2147483648, %v124_v31  ;;  %v135_v37 = vand.u32 2147483647, %v124_v31  ;;  %vm131_vm4 = vweird.f32 %v124_v31 }
 0x1bf   :  { %v138_v39 = vor.u32 1.1754944e-38, %v137_v35  ;;  %vm136_vm6 = vcmp.eq.f32.partialorder %v135_v37, 8.507059e+37 }
 0x1c3   :  { %v179_v32 = vpop.eup %178 }
 0x1c4   :  { %v127_v33 = vmul.f32 %v179_v32, %v124_v31  ;;  %vm132_vm3 = vweird.f32 %v179_v32 }
 0x1c5   :  { %vm133_vm5 = vmor %vm131_vm4, %vm132_vm3 }
 0x1c6   :  { %v128_v34 = vsub.f32 1.0, %v127_v33 }
 0x1c8   :  { %v129_v36 = vmul.f32 %v179_v32, %v128_v34 }
 0x1ca   :  { %v130_v38 = vadd.f32 %v179_v32, %v129_v36 }
 0x1cc   :  { %v134_v40 = vsel %vm133_vm5, %v179_v32, %v130_v38 }
 0x1cd   :  { %v139_v41 = vsel %vm136_vm6, %v138_v39, %v134_v40 }
 0x1ce   :  { %v140_v42 = vmul.f32 %v177_v29, %v139_v41 }
 0x1d0   :  { %141 = vst [vmem:[#allocation2] sm:$0x1] %v140_v42 }
 0x1d1   :  { %152 = dma.vmem_to_hbm [thread:$0]  %s148_s1, 16, %s150_s17, [#allocation3]  }
 0x1d2   :  { %204 = dma.done.wait [#allocation3], 16  }
 0x1d3   :  { %205 = vsyncadd [#allocation3], 4294967280 }
 0x1d4   :  { %157 = vsyncpa [#allocation3], 1 }

</bundles_post_ra>
